<compile_context>
chip_gen: v6e
topology: v6e:2x2x1
jax: 0.10.0
libtpu: 0.0.40
codegen_flags: <defaults>
</compile_context>

<pallas_src>
import functools

import jax
import jax.numpy as jnp
from jax.experimental import pallas as pl
from jax.experimental.pallas import tpu as pltpu


def _postproc_kernel(sizes_ref,            # SMEM (2*Bp,) f32  (w, h) per image
                     vals_ref,             # VMEM (Bt, Kp) f32  top-k raw logits
                     idx_ref,              # VMEM (Bt, Kp) i32  flattened indices
                     boxes_ref,            # VMEM (Bt, 4, Q) f32 cxcywh, coord-major
                     scores_ref,           # VMEM (Bt, Kp) f32
                     labels_ref,           # VMEM (Bt, Kp) i32
                     boxes_out_ref,        # VMEM (Bt, 4, Kp) f32 xyxy, coord-major
                     dup_ref,              # VMEM (1, 1) i32   per-block total
                     *, num_classes, block_b):
    blk = pl.program_id(0)

    # --- scores: sigmoid only on the K winners (sigmoid is strictly monotone,
    # so topk(sigmoid(x)) picks the same entries as topk(x)). Vectorized over
    # the whole (Bt, Kp) block.
    scores_ref[...] = jax.nn.sigmoid(vals_ref[...])

    # --- decompose flattened index: qidx = idx // C, label = idx % C.
    # Exact float trick (wrapper asserts Q*C < 2^22, so the 0.5/C margin is far
    # above the f32 rounding error) avoids vector integer div/mod.
    idx = idx_ref[...]                                          # (Bt, Kp) i32
    inv_c = jnp.float32(1.0 / num_classes)
    qidx = jnp.floor((idx.astype(jnp.float32) + 0.5) * inv_c).astype(jnp.int32)
    labels_ref[...] = idx - qidx * num_classes

    num_queries = boxes_ref.shape[-1]
    kp = idx.shape[-1]
    row = jax.lax.broadcasted_iota(jnp.int32, (num_queries, kp), 0)

    dup_total = jnp.zeros((1, 1), jnp.int32)
    # Short static loop over the images of this block (Bt is small).
    for i in range(block_b):
        # One-hot (Q, Kp) gather matrix for image i. Padded K columns carry
        # idx == Q*C -> qidx == Q, which matches no row, so they contribute
        # nothing to the gather or to the frequency counts.
        onehot = (row == qidx[i:i + 1, :]).astype(jnp.float32)   # (Q, Kp)

        # Gather the selected queries' boxes via a one-hot matmul on the MXU.
        # HIGHEST precision: do not let f32 coordinates truncate to bf16.
        gathered = jnp.dot(boxes_ref[i], onehot,
                           preferred_element_type=jnp.float32,
                           precision=jax.lax.Precision.HIGHEST)  # (4, Kp) cxcywh

        # cxcywh -> xyxy and scale by the original image size (SMEM scalars).
        w_img = sizes_ref[2 * (blk * block_b + i)]
        h_img = sizes_ref[2 * (blk * block_b + i) + 1]
        cx = gathered[0:1, :]
        cy = gathered[1:2, :]
        bw = gathered[2:3, :]
        bh = gathered[3:4, :]
        x1 = (cx - 0.5 * bw) * w_img
        y1 = (cy - 0.5 * bh) * h_img
        x2 = (cx + 0.5 * bw) * w_img
        y2 = (cy + 0.5 * bh) * h_img
        boxes_out_ref[i] = jnp.concatenate([x1, y1, x2, y2], axis=0)

        # repeated-query count (selected_query=True): a query id is "repeated"
        # if it appears more than once among the K selections of this image.
        freq = jnp.sum(onehot, axis=1, keepdims=True)            # (Q, 1)
        dup_total = dup_total + jnp.sum((freq > 1.0).astype(jnp.int32),
                                        axis=0, keepdims=True)

    dup_ref[...] = dup_total


def postprocess(logits, boxes, orig_target_sizes, *,
                num_top_queries=300, num_classes=None):
    """Pallas equivalent of CustomedPostProcessor2.forward (focal-loss branch).

    Returns dense tensors (labels, boxes_xyxy, scores) of shape (B, K), (B, K, 4),
    (B, K) plus the scalar num_repeated_queries (the per-image list-of-dicts
    packaging of the PyTorch module is host-side glue).
    """
    B, Q, C = logits.shape
    assert boxes.shape == (B, Q, 4)
    if num_classes is None:
        num_classes = C
    K = num_top_queries
    assert K <= Q * C
    # Static guards for the float div/mod trick used in the kernel.
    assert Q * C < (1 << 22), "float div/mod trick requires Q*C < 2^22"
    assert num_classes <= C

    # Top-k over the flattened RAW logits; sigmoid is deferred to the winners
    # inside the kernel (monotonicity). Works for bf16 logits too.
    # TODO(synk): fuse the selection itself into Pallas; it dominates end-to-end.
    flat_logits = logits.reshape(B, Q * C)
    topk_vals, topk_idx = jax.lax.top_k(flat_logits, K)
    topk_vals = topk_vals.astype(jnp.float32)                    # (B, K)
    topk_idx = topk_idx.astype(jnp.int32)                        # (B, K)

    # Lane-dense padding of the K axis to a multiple of 128. Padded indices map
    # to query id Q (non-existent) so they are inert inside the kernel.
    Kp = max(128, ((K + 127) // 128) * 128)
    pad_k = Kp - K
    if pad_k:
        topk_vals = jnp.pad(topk_vals, ((0, 0), (0, pad_k)),
                            constant_values=-1e30)
        topk_idx = jnp.pad(topk_idx, ((0, 0), (0, pad_k)),
                           constant_values=Q * num_classes)

    # Batch Bt images per grid step; keep >= 2 steps when B >= 2 so v7x megacore
    # can still split the batch across its two TensorCores.
    Bt = 1 if B <= 1 else min(8, max(1, B // 2))
    Bp = ((B + Bt - 1) // Bt) * Bt
    nblk = Bp // Bt
    pad_b = Bp - B

    # Coordinate-major boxes so the in-kernel box math is lane-dense.
    boxes_cm = jnp.transpose(boxes.astype(jnp.float32), (0, 2, 1))    # (B, 4, Q)
    sizes = orig_target_sizes.astype(jnp.float32).reshape(-1)         # (2B,)

    if pad_b:
        topk_vals = jnp.pad(topk_vals, ((0, pad_b), (0, 0)),
                            constant_values=-1e30)
        topk_idx = jnp.pad(topk_idx, ((0, pad_b), (0, 0)),
                           constant_values=Q * num_classes)
        boxes_cm = jnp.pad(boxes_cm, ((0, pad_b), (0, 0), (0, 0)))
        sizes = jnp.pad(sizes, ((0, 2 * pad_b),))

    vals_blk = topk_vals.reshape(nblk, Bt, Kp)
    idx_blk = topk_idx.reshape(nblk, Bt, Kp)
    boxes_blk = boxes_cm.reshape(nblk, Bt, 4, Q)

    kernel = functools.partial(_postproc_kernel,
                               num_classes=num_classes, block_b=Bt)

    scores, labels, boxes_cm_out, dup = pl.pallas_call(
        kernel,
        grid_spec=pltpu.PrefetchScalarGridSpec(
            num_scalar_prefetch=1,                 # sizes -> SMEM scalars
            grid=(nblk,),
            in_specs=[
                pl.BlockSpec((None, Bt, Kp), lambda b, sz: (b, 0, 0)),     # vals
                pl.BlockSpec((None, Bt, Kp), lambda b, sz: (b, 0, 0)),     # idx
                pl.BlockSpec((None, Bt, 4, Q), lambda b, sz: (b, 0, 0, 0)),  # boxes
            ],
            out_specs=[
                pl.BlockSpec((None, Bt, Kp), lambda b, sz: (b, 0, 0)),     # scores
                pl.BlockSpec((None, Bt, Kp), lambda b, sz: (b, 0, 0)),     # labels
                pl.BlockSpec((None, Bt, 4, Kp), lambda b, sz: (b, 0, 0, 0)),  # boxes
                pl.BlockSpec((None, 1, 1), lambda b, sz: (b, 0, 0)),       # dup
            ],
        ),
        out_shape=(
            jax.ShapeDtypeStruct((nblk, Bt, Kp), jnp.float32),
            jax.ShapeDtypeStruct((nblk, Bt, Kp), jnp.int32),
            jax.ShapeDtypeStruct((nblk, Bt, 4, Kp), jnp.float32),
            jax.ShapeDtypeStruct((nblk, 1, 1), jnp.int32),
        ),
        compiler_params=pltpu.CompilerParams(
            dimension_semantics=("parallel",)),    # batch blocks -> both TCs on v7x
    )(sizes, vals_blk, idx_blk, boxes_blk)

    scores = scores.reshape(Bp, Kp)[:B, :K]                           # (B, K)
    labels = labels.reshape(Bp, Kp)[:B, :K]                           # (B, K)
    boxes_xyxy = jnp.transpose(
        boxes_cm_out.reshape(Bp, 4, Kp)[:B, :, :K], (0, 2, 1))        # (B, K, 4)
    num_repeated_queries = jnp.sum(dup)                               # padded imgs add 0

    # TODO(synk): remap_mscoco_category lookup table and the per-image
    # list-of-dicts result packaging are host-side python glue (not tensor ops).
    return labels, boxes_xyxy, scores, num_repeated_queries


def _reference(logits, boxes, orig_target_sizes, num_top_queries, num_classes):
    """Pure-JAX transcription of the PyTorch module (focal-loss branch)."""
    B, Q, C = logits.shape
    cx, cy, w, h = (boxes[..., i] for i in range(4))
    xyxy = jnp.stack([cx - 0.5 * w, cy - 0.5 * h, cx + 0.5 * w, cy + 0.5 * h],
                     axis=-1)
    scale = jnp.tile(orig_target_sizes.astype(jnp.float32), (1, 2))[:, None, :]
    bbox_pred = xyxy * scale                                     # (B, Q, 4)

    scores_all = jax.nn.sigmoid(logits.astype(jnp.float32)).reshape(B, Q * C)
    scores, index = jax.lax.top_k(scores_all, num_top_queries)
    labels = (index % num_classes).astype(jnp.int32)
    qidx = index // num_classes
    boxes_g = jnp.take_along_axis(bbox_pred, qidx[..., None], axis=1)

    freq = jnp.sum(qidx[:, :, None] == jnp.arange(Q)[None, None, :], axis=1)
    num_rep = jnp.sum(freq > 1).astype(jnp.int32)
    return labels, boxes_g, scores, num_rep


if __name__ == "__main__":
    key = jax.random.PRNGKey(0)
    k1, k2 = jax.random.split(key)

    B, Q, C = 4, 16, 32                   # B=4 -> Bt=2, two grid steps
    K = 8                                 # num_top_queries < Q*C
    logits = jax.random.normal(k1, (B, Q, C), dtype=jnp.float32)
    boxes = jax.random.uniform(k2, (B, Q, 4), dtype=jnp.float32,
                               minval=0.05, maxval=0.45)        # cxcywh in [0,1]
    orig_target_sizes = jnp.array([[640.0, 480.0], [512.0, 512.0],
                                   [800.0, 600.0], [1024.0, 768.0]],
                                  dtype=jnp.float32)

    labels, out_boxes, scores, num_rep = postprocess(
        logits, boxes, orig_target_sizes, num_top_queries=K, num_classes=C)
    jax.block_until_ready((labels, out_boxes, scores, num_rep))

    r_labels, r_boxes, r_scores, r_rep = _reference(
        logits, boxes, orig_target_sizes, K, C)

    assert jnp.allclose(scores, r_scores, atol=1e-5), "scores mismatch"
    assert jnp.array_equal(labels, r_labels), "labels mismatch"
    assert jnp.allclose(out_boxes, r_boxes, rtol=1e-5, atol=1e-3), "boxes mismatch"
    assert int(num_rep) == int(r_rep), "num_repeated_queries mismatch"

    print("KERNEL_OK")
</pallas_src>

<mosaic_0001>
module attributes {stable_mosaic.version = 11 : i64} {
  func.func @_postproc_kernel(%arg0: i32, %arg1: memref<8xf32, #tpu.memory_space<smem>>, %arg2: memref<1x2x128xf32, #tpu.memory_space<vmem>>, %arg3: memref<1x2x128xi32, #tpu.memory_space<vmem>>, %arg4: memref<1x2x4x16xf32, #tpu.memory_space<vmem>>, %arg5: memref<1x2x128xf32, #tpu.memory_space<vmem>>, %arg6: memref<1x2x128xi32, #tpu.memory_space<vmem>>, %arg7: memref<1x2x4x128xf32, #tpu.memory_space<vmem>>, %arg8: memref<1x1x1xi32, #tpu.memory_space<vmem>>) attributes {dimension_semantics = [#tpu.dimension_semantics<parallel>], iteration_bounds = array<i64: 2>, scalar_prefetch = 1 : i64, scratch_operands = 0 : i64, tpu.core_type = #tpu.core_type<tc>, window_params = [{transform_indices = @transform_0, window_bounds = array<i64: 1, 2, 128>}, {transform_indices = @transform_1, window_bounds = array<i64: 1, 2, 128>}, {transform_indices = @transform_2, window_bounds = array<i64: 1, 2, 4, 16>}, {transform_indices = @transform_3, window_bounds = array<i64: 1, 2, 128>}, {transform_indices = @transform_4, window_bounds = array<i64: 1, 2, 128>}, {transform_indices = @transform_5, window_bounds = array<i64: 1, 2, 4, 128>}, {transform_indices = @transform_6, window_bounds = array<i64: 1, 1, 1>}]} {
    %c0 = arith.constant 0 : index
    %c0_0 = arith.constant 0 : index
    %c0_1 = arith.constant 0 : index
    %0 = vector.load %arg2[%c0, %c0_0, %c0_1] : memref<1x2x128xf32, #tpu.memory_space<vmem>>, vector<1x2x128xf32>
    %1 = vector.shape_cast %0 : vector<1x2x128xf32> to vector<2x128xf32>
    %2 = arith.negf %1 : vector<2x128xf32>
    %3 = math.exp %2 : vector<2x128xf32>
    %cst = arith.constant 1.000000e+00 : f32
    %4 = vector.broadcast %cst : f32 to vector<2x128xf32>
    %5 = arith.addf %4, %3 : vector<2x128xf32>
    %6 = arith.divf %4, %5 : vector<2x128xf32>
    %c0_2 = arith.constant 0 : index
    %c0_3 = arith.constant 0 : index
    %c0_4 = arith.constant 0 : index
    %7 = vector.load %arg5[%c0_2, %c0_3, %c0_4] : memref<1x2x128xf32, #tpu.memory_space<vmem>>, vector<1x2x128xf32>
    %8 = vector.shape_cast %7 : vector<1x2x128xf32> to vector<2x128xf32>
    %9 = vector.shape_cast %6 : vector<2x128xf32> to vector<1x2x128xf32>
    tpu.vector_store %arg5[%c0_2, %c0_3, %c0_4], %9 {strides = array<i32>} : memref<1x2x128xf32, #tpu.memory_space<vmem>>, vector<1x2x128xf32>,
    %c0_5 = arith.constant 0 : index
    %c0_6 = arith.constant 0 : index
    %c0_7 = arith.constant 0 : index
    %10 = vector.load %arg3[%c0_5, %c0_6, %c0_7] : memref<1x2x128xi32, #tpu.memory_space<vmem>>, vector<1x2x128xi32>
    %11 = vector.shape_cast %10 : vector<1x2x128xi32> to vector<2x128xi32>
    %12 = arith.sitofp %11 : vector<2x128xi32> to vector<2x128xf32>
    %cst_8 = arith.constant 5.000000e-01 : f32
    %13 = vector.broadcast %cst_8 : f32 to vector<2x128xf32>
    %14 = arith.addf %12, %13 : vector<2x128xf32>
    %cst_9 = arith.constant 3.125000e-02 : f32
    %15 = vector.broadcast %cst_9 : f32 to vector<2x128xf32>
    %16 = arith.mulf %14, %15 : vector<2x128xf32>
    %17 = math.floor %16 : vector<2x128xf32>
    %18 = arith.fptosi %17 : vector<2x128xf32> to vector<2x128xi32>
    %c32_i32 = arith.constant 32 : i32
    %19 = vector.broadcast %c32_i32 : i32 to vector<2x128xi32>
    %20 = arith.muli %18, %19 : vector<2x128xi32>
    %21 = arith.subi %11, %20 : vector<2x128xi32>
    %c0_10 = arith.constant 0 : index
    %c0_11 = arith.constant 0 : index
    %c0_12 = arith.constant 0 : index
    %22 = vector.load %arg6[%c0_10, %c0_11, %c0_12] : memref<1x2x128xi32, #tpu.memory_space<vmem>>, vector<1x2x128xi32>
    %23 = vector.shape_cast %22 : vector<1x2x128xi32> to vector<2x128xi32>
    %24 = vector.shape_cast %21 : vector<2x128xi32> to vector<1x2x128xi32>
    tpu.vector_store %arg6[%c0_10, %c0_11, %c0_12], %24 {strides = array<i32>} : memref<1x2x128xi32, #tpu.memory_space<vmem>>, vector<1x2x128xi32>,
    %25 = tpu.iota {dimensions = array<i32: 0>} : vector<16x128xi32>
    %c0_i32 = arith.constant 0 : i32
    %26 = vector.broadcast %c0_i32 : i32 to vector<1x1xi32>
    %27 = vector.extract_strided_slice %18 {offsets = [0, 0], sizes = [1, 128], strides = [1, 1]} : vector<2x128xi32> to vector<1x128xi32>
    %28 = vector.broadcast %27 : vector<1x128xi32> to vector<16x128xi32>
    %29 = arith.cmpi eq, %25, %28 : vector<16x128xi32>
    %30 = arith.extui %29 : vector<16x128xi1> to vector<16x128xi32>
    %31 = arith.sitofp %30 : vector<16x128xi32> to vector<16x128xf32>
    %c0_13 = arith.constant 0 : index
    %c0_14 = arith.constant 0 : index
    %c0_15 = arith.constant 0 : index
    %c0_16 = arith.constant 0 : index
    %32 = vector.load %arg4[%c0_13, %c0_14, %c0_15, %c0_16] : memref<1x2x4x16xf32, #tpu.memory_space<vmem>>, vector<1x1x4x16xf32>
    %33 = vector.shape_cast %32 : vector<1x1x4x16xf32> to vector<4x16xf32>
    %cst_17 = arith.constant dense<0.000000e+00> : vector<4x128xf32>
    %34 = tpu.matmul %33, %31, %cst_17 {dimension_numbers = #tpu.dot_dimension_numbers<[1], [0], [0], [1], [0, 0, 1, 1], [], []>, precision = #tpu.contract_precision<fp32>} : vector<4x16xf32>, vector<16x128xf32>, vector<4x128xf32> -> vector<4x128xf32>
    %c2_i32 = arith.constant 2 : i32
    %35 = arith.muli %arg0, %c2_i32 : i32
    %c0_i32_18 = arith.constant 0 : i32
    %36 = arith.addi %35, %c0_i32_18 : i32
    %c2_i32_19 = arith.constant 2 : i32
    %37 = arith.muli %c2_i32_19, %36 : i32
    %38 = arith.index_cast %37 : i32 to index
    %39 = memref.load %arg1[%38] : memref<8xf32, #tpu.memory_space<smem>>
    %c2_i32_20 = arith.constant 2 : i32
    %40 = arith.muli %arg0, %c2_i32_20 : i32
    %c0_i32_21 = arith.constant 0 : i32
    %41 = arith.addi %40, %c0_i32_21 : i32
    %c2_i32_22 = arith.constant 2 : i32
    %42 = arith.muli %c2_i32_22, %41 : i32
    %c1_i32 = arith.constant 1 : i32
    %43 = arith.addi %42, %c1_i32 : i32
    %44 = arith.index_cast %43 : i32 to index
    %45 = memref.load %arg1[%44] : memref<8xf32, #tpu.memory_space<smem>>
    %46 = vector.extract_strided_slice %34 {offsets = [0, 0], sizes = [1, 128], strides = [1, 1]} : vector<4x128xf32> to vector<1x128xf32>
    %47 = vector.extract_strided_slice %34 {offsets = [1, 0], sizes = [1, 128], strides = [1, 1]} : vector<4x128xf32> to vector<1x128xf32>
    %48 = vector.extract_strided_slice %34 {offsets = [2, 0], sizes = [1, 128], strides = [1, 1]} : vector<4x128xf32> to vector<1x128xf32>
    %49 = vector.extract_strided_slice %34 {offsets = [3, 0], sizes = [1, 128], strides = [1, 1]} : vector<4x128xf32> to vector<1x128xf32>
    %cst_23 = arith.constant 5.000000e-01 : f32
    %50 = vector.broadcast %cst_23 : f32 to vector<1x128xf32>
    %51 = arith.mulf %50, %48 : vector<1x128xf32>
    %52 = arith.subf %46, %51 : vector<1x128xf32>
    %53 = vector.broadcast %39 : f32 to vector<1x128xf32>
    %54 = arith.mulf %52, %53 : vector<1x128xf32>
    %cst_24 = arith.constant 5.000000e-01 : f32
    %55 = vector.broadcast %cst_24 : f32 to vector<1x128xf32>
    %56 = arith.mulf %55, %49 : vector<1x128xf32>
    %57 = arith.subf %47, %56 : vector<1x128xf32>
    %58 = vector.broadcast %45 : f32 to vector<1x128xf32>
    %59 = arith.mulf %57, %58 : vector<1x128xf32>
    %cst_25 = arith.constant 5.000000e-01 : f32
    %60 = vector.broadcast %cst_25 : f32 to vector<1x128xf32>
    %61 = arith.mulf %60, %48 : vector<1x128xf32>
    %62 = arith.addf %46, %61 : vector<1x128xf32>
    %63 = vector.broadcast %39 : f32 to vector<1x128xf32>
    %64 = arith.mulf %62, %63 : vector<1x128xf32>
    %cst_26 = arith.constant 5.000000e-01 : f32
    %65 = vector.broadcast %cst_26 : f32 to vector<1x128xf32>
    %66 = arith.mulf %65, %49 : vector<1x128xf32>
    %67 = arith.addf %47, %66 : vector<1x128xf32>
    %68 = vector.broadcast %45 : f32 to vector<1x128xf32>
    %69 = arith.mulf %67, %68 : vector<1x128xf32>
    %70 = tpu.concatenate %54, %59, %64, %69 in 0 : vector<1x128xf32>, vector<1x128xf32>, vector<1x128xf32>, vector<1x128xf32> -> vector<4x128xf32>
    %c0_27 = arith.constant 0 : index
    %c0_28 = arith.constant 0 : index
    %c0_29 = arith.constant 0 : index
    %c0_30 = arith.constant 0 : index
    %71 = vector.load %arg7[%c0_27, %c0_28, %c0_29, %c0_30] : memref<1x2x4x128xf32, #tpu.memory_space<vmem>>, vector<1x1x4x128xf32>
    %72 = vector.shape_cast %71 : vector<1x1x4x128xf32> to vector<4x128xf32>
    %73 = vector.shape_cast %70 : vector<4x128xf32> to vector<1x1x4x128xf32>
    tpu.vector_store %arg7[%c0_27, %c0_28, %c0_29, %c0_30], %73 {strides = array<i32>} : memref<1x2x4x128xf32, #tpu.memory_space<vmem>>, vector<1x1x4x128xf32>,
    %cst_31 = arith.constant dense<0.000000e+00> : vector<16xf32>
    %74 = vector.multi_reduction <add>, %31, %cst_31 [1] : vector<16x128xf32> to vector<16xf32>
    %75 = vector.shape_cast %74 : vector<16xf32> to vector<16x1xf32>
    %cst_32 = arith.constant 1.000000e+00 : f32
    %76 = vector.broadcast %cst_32 : f32 to vector<16x1xf32>
    %77 = arith.cmpf ogt, %75, %76 : vector<16x1xf32>
    %78 = arith.extui %77 : vector<16x1xi1> to vector<16x1xi32>
    %cst_33 = arith.constant dense<0> : vector<1xi32>
    %79 = vector.multi_reduction <add>, %78, %cst_33 [0] : vector<16x1xi32> to vector<1xi32>
    %80 = vector.shape_cast %79 : vector<1xi32> to vector<1x1xi32>
    %81 = arith.addi %26, %80 : vector<1x1xi32>
    %82 = vector.extract_strided_slice %18 {offsets = [1, 0], sizes = [1, 128], strides = [1, 1]} : vector<2x128xi32> to vector<1x128xi32>
    %83 = vector.broadcast %82 : vector<1x128xi32> to vector<16x128xi32>
    %84 = arith.cmpi eq, %25, %83 : vector<16x128xi32>
    %85 = arith.extui %84 : vector<16x128xi1> to vector<16x128xi32>
    %86 = arith.sitofp %85 : vector<16x128xi32> to vector<16x128xf32>
    %c0_34 = arith.constant 0 : index
    %c1 = arith.constant 1 : index
    %c0_35 = arith.constant 0 : index
    %c0_36 = arith.constant 0 : index
    %87 = vector.load %arg4[%c0_34, %c1, %c0_35, %c0_36] : memref<1x2x4x16xf32, #tpu.memory_space<vmem>>, vector<1x1x4x16xf32>
    %88 = vector.shape_cast %87 : vector<1x1x4x16xf32> to vector<4x16xf32>
    %cst_37 = arith.constant dense<0.000000e+00> : vector<4x128xf32>
    %89 = tpu.matmul %88, %86, %cst_37 {dimension_numbers = #tpu.dot_dimension_numbers<[1], [0], [0], [1], [0, 0, 1, 1], [], []>, precision = #tpu.contract_precision<fp32>} : vector<4x16xf32>, vector<16x128xf32>, vector<4x128xf32> -> vector<4x128xf32>
    %c2_i32_38 = arith.constant 2 : i32
    %90 = arith.muli %arg0, %c2_i32_38 : i32
    %c1_i32_39 = arith.constant 1 : i32
    %91 = arith.addi %90, %c1_i32_39 : i32
    %c2_i32_40 = arith.constant 2 : i32
    %92 = arith.muli %c2_i32_40, %91 : i32
    %93 = arith.index_cast %92 : i32 to index
    %94 = memref.load %arg1[%93] : memref<8xf32, #tpu.memory_space<smem>>
    %c2_i32_41 = arith.constant 2 : i32
    %95 = arith.muli %arg0, %c2_i32_41 : i32
    %c1_i32_42 = arith.constant 1 : i32
    %96 = arith.addi %95, %c1_i32_42 : i32
    %c2_i32_43 = arith.constant 2 : i32
    %97 = arith.muli %c2_i32_43, %96 : i32
    %c1_i32_44 = arith.constant 1 : i32
    %98 = arith.addi %97, %c1_i32_44 : i32
    %99 = arith.index_cast %98 : i32 to index
    %100 = memref.load %arg1[%99] : memref<8xf32, #tpu.memory_space<smem>>
    %101 = vector.extract_strided_slice %89 {offsets = [0, 0], sizes = [1, 128], strides = [1, 1]} : vector<4x128xf32> to vector<1x128xf32>
    %102 = vector.extract_strided_slice %89 {offsets = [1, 0], sizes = [1, 128], strides = [1, 1]} : vector<4x128xf32> to vector<1x128xf32>
    %103 = vector.extract_strided_slice %89 {offsets = [2, 0], sizes = [1, 128], strides = [1, 1]} : vector<4x128xf32> to vector<1x128xf32>
    %104 = vector.extract_strided_slice %89 {offsets = [3, 0], sizes = [1, 128], strides = [1, 1]} : vector<4x128xf32> to vector<1x128xf32>
    %cst_45 = arith.constant 5.000000e-01 : f32
    %105 = vector.broadcast %cst_45 : f32 to vector<1x128xf32>
    %106 = arith.mulf %105, %103 : vector<1x128xf32>
    %107 = arith.subf %101, %106 : vector<1x128xf32>
    %108 = vector.broadcast %94 : f32 to vector<1x128xf32>
    %109 = arith.mulf %107, %108 : vector<1x128xf32>
    %cst_46 = arith.constant 5.000000e-01 : f32
    %110 = vector.broadcast %cst_46 : f32 to vector<1x128xf32>
    %111 = arith.mulf %110, %104 : vector<1x128xf32>
    %112 = arith.subf %102, %111 : vector<1x128xf32>
    %113 = vector.broadcast %100 : f32 to vector<1x128xf32>
    %114 = arith.mulf %112, %113 : vector<1x128xf32>
    %cst_47 = arith.constant 5.000000e-01 : f32
    %115 = vector.broadcast %cst_47 : f32 to vector<1x128xf32>
    %116 = arith.mulf %115, %103 : vector<1x128xf32>
    %117 = arith.addf %101, %116 : vector<1x128xf32>
    %118 = vector.broadcast %94 : f32 to vector<1x128xf32>
    %119 = arith.mulf %117, %118 : vector<1x128xf32>
    %cst_48 = arith.constant 5.000000e-01 : f32
    %120 = vector.broadcast %cst_48 : f32 to vector<1x128xf32>
    %121 = arith.mulf %120, %104 : vector<1x128xf32>
    %122 = arith.addf %102, %121 : vector<1x128xf32>
    %123 = vector.broadcast %100 : f32 to vector<1x128xf32>
    %124 = arith.mulf %122, %123 : vector<1x128xf32>
    %125 = tpu.concatenate %109, %114, %119, %124 in 0 : vector<1x128xf32>, vector<1x128xf32>, vector<1x128xf32>, vector<1x128xf32> -> vector<4x128xf32>
    %c0_49 = arith.constant 0 : index
    %c1_50 = arith.constant 1 : index
    %c0_51 = arith.constant 0 : index
    %c0_52 = arith.constant 0 : index
    %126 = vector.load %arg7[%c0_49, %c1_50, %c0_51, %c0_52] : memref<1x2x4x128xf32, #tpu.memory_space<vmem>>, vector<1x1x4x128xf32>
    %127 = vector.shape_cast %126 : vector<1x1x4x128xf32> to vector<4x128xf32>
    %128 = vector.shape_cast %125 : vector<4x128xf32> to vector<1x1x4x128xf32>
    tpu.vector_store %arg7[%c0_49, %c1_50, %c0_51, %c0_52], %128 {strides = array<i32>} : memref<1x2x4x128xf32, #tpu.memory_space<vmem>>, vector<1x1x4x128xf32>,
    %cst_53 = arith.constant dense<0.000000e+00> : vector<16xf32>
    %129 = vector.multi_reduction <add>, %86, %cst_53 [1] : vector<16x128xf32> to vector<16xf32>
    %130 = vector.shape_cast %129 : vector<16xf32> to vector<16x1xf32>
    %cst_54 = arith.constant 1.000000e+00 : f32
    %131 = vector.broadcast %cst_54 : f32 to vector<16x1xf32>
    %132 = arith.cmpf ogt, %130, %131 : vector<16x1xf32>
    %133 = arith.extui %132 : vector<16x1xi1> to vector<16x1xi32>
    %cst_55 = arith.constant dense<0> : vector<1xi32>
    %134 = vector.multi_reduction <add>, %133, %cst_55 [0] : vector<16x1xi32> to vector<1xi32>
    %135 = vector.shape_cast %134 : vector<1xi32> to vector<1x1xi32>
    %136 = arith.addi %81, %135 : vector<1x1xi32>
    %c0_56 = arith.constant 0 : index
    %c0_57 = arith.constant 0 : index
    %c0_58 = arith.constant 0 : index
    %137 = vector.load %arg8[%c0_56, %c0_57, %c0_58] : memref<1x1x1xi32, #tpu.memory_space<vmem>>, vector<1x1x1xi32>
    %138 = vector.shape_cast %137 : vector<1x1x1xi32> to vector<1x1xi32>
    %139 = vector.shape_cast %136 : vector<1x1xi32> to vector<1x1x1xi32>
    tpu.vector_store %arg8[%c0_56, %c0_57, %c0_58], %139 {strides = array<i32>} : memref<1x1x1xi32, #tpu.memory_space<vmem>>, vector<1x1x1xi32>,
    return
  }
  func.func @transform_0(%arg0: i32, %arg1: memref<8xf32, #tpu.memory_space<smem>>) -> (i32, i32, i32) {
    %c0_i32 = arith.constant 0 : i32
    %c0_i32_0 = arith.constant 0 : i32
    %c0_i32_1 = arith.constant 0 : i32
    return %arg0, %c0_i32, %c0_i32_0 : i32, i32, i32
  }
  func.func @transform_1(%arg0: i32, %arg1: memref<8xf32, #tpu.memory_space<smem>>) -> (i32, i32, i32) {
    %c0_i32 = arith.constant 0 : i32
    %c0_i32_0 = arith.constant 0 : i32
    %c0_i32_1 = arith.constant 0 : i32
    return %arg0, %c0_i32, %c0_i32_0 : i32, i32, i32
  }
  func.func @transform_2(%arg0: i32, %arg1: memref<8xf32, #tpu.memory_space<smem>>) -> (i32, i32, i32, i32) {
    %c0_i32 = arith.constant 0 : i32
    %c0_i32_0 = arith.constant 0 : i32
    %c0_i32_1 = arith.constant 0 : i32
    %c0_i32_2 = arith.constant 0 : i32
    return %arg0, %c0_i32, %c0_i32_0, %c0_i32_1 : i32, i32, i32, i32
  }
  func.func @transform_3(%arg0: i32, %arg1: memref<8xf32, #tpu.memory_space<smem>>) -> (i32, i32, i32) {
    %c0_i32 = arith.constant 0 : i32
    %c0_i32_0 = arith.constant 0 : i32
    %c0_i32_1 = arith.constant 0 : i32
    return %arg0, %c0_i32, %c0_i32_0 : i32, i32, i32
  }
  func.func @transform_4(%arg0: i32, %arg1: memref<8xf32, #tpu.memory_space<smem>>) -> (i32, i32, i32) {
    %c0_i32 = arith.constant 0 : i32
    %c0_i32_0 = arith.constant 0 : i32
    %c0_i32_1 = arith.constant 0 : i32
    return %arg0, %c0_i32, %c0_i32_0 : i32, i32, i32
  }
  func.func @transform_5(%arg0: i32, %arg1: memref<8xf32, #tpu.memory_space<smem>>) -> (i32, i32, i32, i32) {
    %c0_i32 = arith.constant 0 : i32
    %c0_i32_0 = arith.constant 0 : i32
    %c0_i32_1 = arith.constant 0 : i32
    %c0_i32_2 = arith.constant 0 : i32
    return %arg0, %c0_i32, %c0_i32_0, %c0_i32_1 : i32, i32, i32, i32
  }
  func.func @transform_6(%arg0: i32, %arg1: memref<8xf32, #tpu.memory_space<smem>>) -> (i32, i32, i32) {
    %c0_i32 = arith.constant 0 : i32
    %c0_i32_0 = arith.constant 0 : i32
    %c0_i32_1 = arith.constant 0 : i32
    return %arg0, %c0_i32, %c0_i32_0 : i32, i32, i32
  }
}

</mosaic_0001>

<bundles_post_ra>
// kernel: tpu_custom_call.1
= control target key start
LH: loop header
LB: loop body
LE: loop exit
PB: predicated region body
PF: predicated region fallthrough
CT: control target
= control target key end

     0   :  { %s2157_s24 = smov [#allocation3]   ;;  %s2693_s0 = inlined_call_operand.hbm [shape: f32[8], index: 0, kind: input, shape index: {}]   ;;  %s2694_s1 = inlined_call_operand.hbm [shape: f32[2,2,128], index: 1, kind: input, shape index: {}]   ;;  %s2695_s2 = inlined_call_operand.hbm [shape: s32[2,2,128], index: 2, kind: input, shape index: {}]   ;;  %s2696_s3 = inlined_call_operand.hbm [shape: f32[2,2,4,16], index: 3, kind: input, shape index: {}]   ;;  %s2697_s4 = inlined_call_operand.hbm [shape: f32[2,2,128], index: 4, kind: output, shape index: {0}]   ;;  %s2698_s5 = inlined_call_operand.hbm [shape: s32[2,2,128], index: 5, kind: output, shape index: {1}]   ;;  %s2699_s6 = inlined_call_operand.hbm [shape: f32[2,2,4,128], index: 6, kind: output, shape index: {2}]   ;;  %s2700_s7 = inlined_call_operand.vmem [shape: s32[2,1,1], index: 7, kind: output, shape index: {3}]  }
   0x1   :  { %2711 = sst [smem:[#allocation23_spill]] %s2695_s2 }
   0x2   :  { %14 = dma.hbm_to_smem %s2693_s0, 16, %s2157_s24, [#allocation2] }
   0x3   :  { %2123 = dma.done.wait [#allocation2], 16 }
   0x4   :  { %2124 = vsyncadd [#allocation2], 4294967280 }
   0x5   :  { %16 = sfence }
   0x6   :  { %17 = vsyncpa [#allocation5], 0 }
   0x7   :  { %19 = vsyncpa [#allocation5 + $0x1], 0 }
   0x8   :  { %20 = vsyncpa [#allocation8], 0 }
   0x9   :  { %22 = vsyncpa [#allocation8 + $0x1], 0 }
   0xa   :  { %23 = vsyncpa [#allocation6], 0 }
   0xb   :  { %25 = vsyncpa [#allocation6 + $0x1], 0 }
   0xc   :  { %26 = vsyncpa [#allocation12], 0 }
   0xd   :  { %28 = vsyncpa [#allocation12 + $0x1], 0  ;;  %s2215_s27 = smov 0   ;;  %s2217_s28 = smov 0  }
   0xe   :  { %s2219_s29 = smov 0   ;;  %s2221_s30 = smov 0  }
   0xf LB: > { %2712 = sst [smem:[#allocation19_spill]] %s2151_s29  ;;  %s2236_s0 = sadd.s32 4294967295, %s2155_s30   ;;  %s2155_s30 = sphi %s2221_s30, %s2732_s30   ;;  %s2151_s29 = sphi %s2219_s29, %s2734_s29   ;;  %s2147_s28 = sphi %s2217_s28, %s2736_s28   ;;  %s2143_s27 = sphi %s2215_s27, %s2735_s27  }
  0x10   : > { %2713 = sst [smem:[#allocation20_spill]] %s2155_s30  ;;  %s2701_s8 = sadd.s32 4294967294, %s2155_s30  }
  0x11   : > { %s2240_s9 = sadd.s32 1, %s2155_s30   ;;  %s41_s10 = sadd.s32 1, %s2151_s29 }
  0x12   : > { %2714 = sst [smem:[#allocation21_spill]] %s2240_s9  ;;  %s38_s11 = ssub.s32 %s2155_s30, %s2240_s9 }
  0x13   : > { %p48_p0 = scmp.ne.s32.totalorder %s2151_s29, %s2147_s28  ;;  %p39_p1 = scmp.eq.s32.totalorder %s38_s11, 0 }
  0x14   : > { %p49_p2 = scmp.eq.s32.totalorder %s2155_s30, 0  ;;  %p54_p3 = scmp.ne.s32.totalorder %s2147_s28, %s2143_s27 }
  0x15   : > { %p55_p4 = scmp.eq.s32.totalorder %s2236_s0, 0  ;;  %p130_p7 = scmp.eq.s32.totalorder %s2236_s0, 1 }
  0x16   : > { %s2252_s12 = scalar_select %p39_p1, %s2151_s29, %s41_s10  }
  0x17   : > { %p50_p5 = por %p49_p2, %p48_p0  ;;  %p2254_p6 = por %p55_p4, %p54_p3 }
  0x18   : > { %2715 = sst [smem:[#allocation22_spill]] %s2252_s12  ;;  %p136_p8 = scmp.eq.s32.totalorder %s2701_s8, 1 }
  0x19   : > { %s2716_s13 = scalar_select %p2254_p6, 1, 0 }
  0x1a   : > { %p1890_p10 = scmp.lt.s32.totalorder %s2155_s30, 2  ;;  %p2263_p11 = por %p130_p7, %p48_p0 }
  0x1b   : > { %p2267_p12 = por %p136_p8, %p54_p3  ;;  %s2272_s16 = sand.u32 1, %s2151_s29  }
  0x1c   : > { %s2717_s14 = scalar_select %p2263_p11, 1, 0 }
  0x1d   : > { %s2718_s15 = scalar_select %p2267_p12, 1, 0 }
  0x1e   : > { %s2703_s17 = sshll.u32 %s2155_s30, 5  ;;  %s2702_s18 = sshll.u32 %s2272_s16, 1 }
  0x1f   : > { %p2276_p13 = pnand %p1890_p10, %p50_p5  ;;  %s252_s20 = sand.u32 1, %s2155_s30  }
  0x20   : > { %s2720_s2 = sld [smem:[#allocation23_spill]]  ;;  %s256_s24 = scalar_lea.vmem [#allocation7], %s2702_s18 }
  0x21   : > { %s263_s25 = sshll.u32 %s256_s24, 4  ;;  %s1690_s26 = sshll.u32 %s2272_s16, 3  ;;  %s264_s25 = int_to_ptr.vmem [resolvable:$true] %s263_s25 }
  0x22   : > { %s2291_s10 = scalar_lea.sflag [#allocation8], %s252_s20  ;;  %p2297_p1 = pneg %p2276_p13 }
  0x26   : > { %s2286_s23 = scalar_lea.hbm %s2720_s2, %s2703_s17  ;;  %s1950_s18 = scalar_lea.hbm %s2720_s2, 64 }
  0x27   : > { %s1945_s11 = scalar_lea.hbm %s2286_s23, 32  ;;  %p1951_p4 = scmp.lt.s32.totalorder %s2286_s23, %s2720_s2 }
  0x28   : > { %p1946_p0 = scmp.ne.s32.totalorder %s2286_s23, %s1945_s11  ;;  %p1952_p5 = scmp.lt.s32.totalorder %s1950_s18, %s1945_s11 }
  0x2a   : > { %p1948_p2 = pnand %p2297_p1, %p1946_p0  ;;  %p1953_p7 = por %p1952_p5, %p1951_p4 }
  0x2c   : > { %p1949_p3 = pneg %p1948_p2 }
  0x2e   : > { %p1954_p8 = pnand %p1953_p7, %p1949_p3 }
  0x30   : > { %1957 = shalt.err (!%p1954_p8)
}
  0x31   : > { %s1958_s20 = scalar_lea.vmem %s264_s25, 32  ;;  %s2158_s12 = smov [#allocation7]  }
  0x32   : > { %p1959_p10 = scmp.ne.s32.totalorder %s264_s25, %s1958_s20  ;;  %s1963_s29 = sshll.u32 %s2158_s12, 4  ;;  %s1964_s29 = int_to_ptr.vmem [resolvable:$false] %s1963_s29 }
  0x33   : > { %s1965_s9 = scalar_lea.vmem %s1964_s29, 64  ;;  %p1966_p0 = scmp.lt.s32.totalorder %s264_s25, %s1964_s29 }
  0x34   : > { %p1961_p9 = pnand %p1959_p10, %p2297_p1  ;;  %p1967_p2 = scmp.lt.s32.totalorder %s1965_s9, %s1958_s20 }
  0x36   : > { %p1962_p12 = pneg %p1961_p9  ;;  %p1968_p11 = por %p1967_p2, %p1966_p0 }
  0x38   : > { %p1969_p6 = pnand %p1968_p11, %p1962_p12 }
  0x3a   : > { %1972 = shalt.err (!%p1969_p6)
}
  0x3b   : > { %1876 = dma.hbm_to_vmem [thread:$0]  (!%p2276_p13), %s2286_s23, 32, %s264_s25, %s2291_s10  }
  0x3c   : > { %p1693_p9 = scmp.ge.s32.totalorder %s2155_s30, 1  ;;  %s274_s12 = scalar_lea.vmem [#allocation9], %s1690_s26 }
  0x3d   : > { %s281_s17 = sshll.u32 %s274_s12, 4  ;;  %p289_p3 = scmp.lt.s32.totalorder %s2155_s30, 3  ;;  %s2318_s17 = int_to_ptr.vmem [resolvable:$true] %s281_s17 }
  0x3e   : > { %s2723_s9 = sshll.u32 %s2155_s30, 5  ;;  %s2724_s22 = sshll.u32 %s2272_s16, 1 }
  0x3f   : > { %p2320_p11 = pnand %p1693_p9, %p289_p3  ;;  %s2329_s21 = scalar_lea.hbm %s2694_s1, %s2723_s9 }
  0x40   : > { %s238_s23 = scalar_lea.vmem [#allocation4], %s2724_s22  ;;  %s1731_s26 = sshll.u32 %s2155_s30, 7 }
  0x41   : > { %s2722_s29 = scalar_select %p2320_p11, 1, 0 }
  0x42   : > { %s245_s25 = sshll.u32 %s238_s23, 4  ;;  %s235_s24 = scalar_lea.sflag [#allocation5], %s2272_s16  ;;  %s246_s25 = int_to_ptr.vmem [resolvable:$true] %s245_s25 }
  0x43   : > { %s1973_s20 = scalar_lea.hbm %s2329_s21, 32  ;;  %s1978_s18 = scalar_lea.hbm %s2694_s1, 64 }
  0x44   : > { %p1974_p6 = scmp.ne.s32.totalorder %s2329_s21, %s1973_s20  ;;  %p1979_p5 = scmp.lt.s32.totalorder %s2329_s21, %s2694_s1 }
  0x45   : > { %p1980_p7 = scmp.lt.s32.totalorder %s1978_s18, %s1973_s20 }
  0x46   : > { %p1976_p12 = pnand %p1974_p6, %p2297_p1 }
  0x47   : > { %p1981_p8 = por %p1980_p7, %p1979_p5 }
  0x48   : > { %p1977_p4 = pneg %p1976_p12 }
  0x4a   : > { %p1982_p10 = pnand %p1981_p8, %p1977_p4 }
  0x4c   : > { %1985 = shalt.err (!%p1982_p10)
}
  0x4d   : > { %s1986_s22 = scalar_lea.vmem %s246_s25, 32  ;;  %s2159_s16 = smov [#allocation4]  }
  0x4e   : > { %p1987_p0 = scmp.ne.s32.totalorder %s246_s25, %s1986_s22  ;;  %s1991_s23 = sshll.u32 %s2159_s16, 4  ;;  %s1992_s23 = int_to_ptr.vmem [resolvable:$false] %s1991_s23 }
  0x4f   : > { %s1993_s30 = scalar_lea.vmem %s1992_s23, 64  ;;  %p1994_p3 = scmp.lt.s32.totalorder %s246_s25, %s1992_s23 }
  0x50   : > { %p1989_p2 = pnand %p1987_p0, %p2297_p1  ;;  %p1995_p6 = scmp.lt.s32.totalorder %s1993_s30, %s1986_s22 }
  0x52   : > { %p1990_p9 = pneg %p1989_p2  ;;  %p1996_p12 = por %p1995_p6, %p1994_p3 }
  0x54   : > { %p1997_p11 = pnand %p1996_p12, %p1990_p9 }
  0x56   : > { %2000 = shalt.err (!%p1997_p11)
}
  0x57   : > { %1873 = dma.hbm_to_vmem [thread:$0]  (!%p2276_p13), %s2329_s21, 32, %s246_s25, %s235_s24  }
  0x58   : > { %s2354_s12 = scalar_lea.hbm %s2696_s3, %s1731_s26  ;;  %s2006_s11 = scalar_lea.hbm %s2696_s3, 256 }
  0x59   : > { %s2001_s18 = scalar_lea.hbm %s2354_s12, 128  ;;  %p2007_p11 = scmp.lt.s32.totalorder %s2354_s12, %s2696_s3 }
  0x5a   : > { %p2002_p4 = scmp.ne.s32.totalorder %s2354_s12, %s2001_s18  ;;  %p2008_p8 = scmp.lt.s32.totalorder %s2006_s11, %s2001_s18 }
  0x5c   : > { %p2004_p5 = pnand %p2002_p4, %p2297_p1  ;;  %p2009_p10 = por %p2008_p8, %p2007_p11 }
  0x5e   : > { %p2005_p7 = pneg %p2004_p5 }
  0x60   : > { %p2010_p0 = pnand %p2009_p10, %p2005_p7 }
  0x62   : > { %2013 = shalt.err (!%p2010_p0)
}
  0x63   : > { %s2014_s21 = scalar_lea.vmem %s2318_s17, 128  ;;  %s2160_s25 = smov [#allocation9]  }
  0x64   : > { %p2015_p2 = scmp.ne.s32.totalorder %s2318_s17, %s2014_s21  ;;  %s2019_s26 = sshll.u32 %s2160_s25, 4  ;;  %s2020_s26 = int_to_ptr.vmem [resolvable:$false] %s2019_s26 }
  0x65   : > { %s2021_s24 = scalar_lea.vmem %s2020_s26, 256  ;;  %p2022_p6 = scmp.lt.s32.totalorder %s2318_s17, %s2020_s26 }
  0x66   : > { %p2017_p9 = pnand %p2015_p2, %p2297_p1  ;;  %p2023_p12 = scmp.lt.s32.totalorder %s2021_s24, %s2014_s21 }
  0x68   : > { %p2018_p3 = pneg %p2017_p9  ;;  %p2024_p4 = por %p2023_p12, %p2022_p6 }
  0x6a   : > { %p2025_p5 = pnand %p2024_p4, %p2018_p3 }
  0x6c   : > { %2028 = shalt.err (!%p2025_p5)
}
  0x6d   : > { %s2161_s23 = smov 64   ;;  %s2162_s2 = smov 4  }
  0x6e   : > { %1879 = dma.hbm_to_vmem [thread:$0]  (!%p2276_p13), %s2354_s12, 128, %s2318_s17, %s2291_s10, %s2161_s23, %s2161_s23, %s2162_s2  }
  0x6f   : > { %p2725_p1 = scmp.ne.s32.totalorder %s2722_s29, 0 }
  0x70   : > { %s2380_s8 = sand.u32 (!%p2725_p1), 1, %s2147_s28   ;;  %p2726_p7 = scmp.ne.s32.totalorder (!%p2725_p1), %s2716_s13, 0 }
  0x71   : > { %293 = sbr.rel (%p2725_p1) target bundleno = 397 (0x18d), region = 32  ;;  %s2383_s20 = sshll.u32 (!%p2725_p1), %s2380_s8, 1 }
  0x72   : > { %s296_s18 = scalar_lea.sflag (!%p2725_p1), [#allocation5], %s2380_s8  ;;  %s299_s30 = scalar_lea.vmem (!%p2725_p1), [#allocation4], %s2383_s20 }
  0x76   : > { %2126 = dma.done.wait (%p2726_p7), %s296_s18, 32  }
  0x77   : > { %2128 = vsyncadd (%p2726_p7), %s296_s18, 4294967264  ;;  %s304_s19 = sand.u32 1, %s2236_s0   ;;  %s308_s17 = scalar_lea.vmem [#allocation7], %s2383_s20 }
  0x78   : > { %s305_s10 = scalar_lea.sflag [#allocation8], %s304_s19 }
  0x79   : > { %2130 = dma.done.wait (%p2726_p7), %s305_s10, 160  }
  0x7a   : > { %2132 = vsyncadd (%p2726_p7), %s305_s10, 4294967136  ;;  %v2163_v0 = vmov 0.0   ;;  %vm2164_vm0 = vmmov 0   ;;  %s1696_s29 = sshll.u32 %s2380_s8, 3  ;;  %vm403_vm1 = vcmask 130048   ;;  %v389_v4 = vlaneseq  ;;  %s1725_s12 = sshll.u32 %s2236_s0, 5 }
  0x7b   : > { %1772 = vmatprep.subr.mxu0 %v2163_v0  ;;  %1776 = vmatprep.mubr.msk.f32.mxu0 %vm2164_vm0, %v2163_v0  ;;  %v2406_v1 = vld [vmem:[%s308_s17] sm:$0x3]  ;;  %s317_s13 = scalar_lea.vmem [#allocation9], %s1696_s29  ;;  %v2165_v24 = vmov 1.0   ;;  %v372_v50 = vld [vmem:[%s299_s30] sm:$0x3]  ;;  %s1469_s21 = scalar_lea.hbm %s2698_s5, %s1725_s12 }
  0x7c   : > { %1779 = vmatprep.subr.mxu1 %v2163_v0  ;;  %1783 = vmatprep.mubr.msk.f32.mxu1 %vm2164_vm0, %v2163_v0  ;;  %v402_v2 = vld [vmem:[%s317_s13] sm:$0xf]  ;;  %v381_v3 = vcvt.s32.f32 %v2406_v1  ;;  %v2417_v10 = vshrl.u32 %v389_v4, 7  ;;  %v1712_v19 = vld [vmem:[%s317_s13 + $0x4] sm:$0xf]  ;;  %s356_s9 = scalar_lea.vmem [#allocation11], %s2383_s20 }
  0x7d   : > { %v405_v5 = vsel %vm403_vm1, %v402_v2, 0  ;;  %v923_v22 = vsel %vm403_vm1, %v1712_v19, 0  ;;  %v1700_v51 = vmul.f32 -1.442695, %v372_v50  ;;  %s1471_s11 = sshll.u32 %s356_s9, 4  ;;  %s2591_s25 = scalar_lea.sflag [#allocation12], %s304_s19  ;;  %s1472_s11 = int_to_ptr.vmem [resolvable:$true] %s1471_s11 }
  0x7e   : > { %v2412_v6 = vand.u32 4294901760, %v405_v5  ;;  %v382_v7 = vadd.f32 0.5, %v381_v3  ;;  %v394_v14 = vsub.s32 0, %v2417_v10  ;;  %v912_v15 = vsub.s32 1, %v2417_v10  ;;  %s2029_s26 = scalar_lea.vmem %s1472_s11, 32  ;;  %p2727_p11 = scmp.ne.s32.totalorder %s2717_s14, 0 }
  0x7f   : > { %v2425_v17 = vadd.s32 8, %v2417_v10  ;;  %v2460_v28 = vand.u32 4294901760, %v923_v22  ;;  %1933 = vpow2.f32 %v1700_v51  ;;  %p2030_p13 = scmp.ne.s32.totalorder %s1472_s11, %s2029_s26  ;;  %s2166_s24 = smov [#allocation11]  }
  0x80   : > { %v2415_v8 = vsub.f32 %v405_v5, %v2412_v6  ;;  %v383_v9 = vmul.f32 0.03125, %v382_v7  ;;  %s2033_s23 = sshll.u32 %s2166_s24, 4  ;;  %s2034_s23 = int_to_ptr.vmem [resolvable:$false] %s2033_s23 }
  0x81   : > { %v2483_v36 = vsub.f32 %v923_v22, %v2460_v28  ;;  %p2031_p8 = pnand %p2030_p13, %p2727_p11  ;;  %s2035_s2 = scalar_lea.vmem %s2034_s23, 64 }
  0x82   : > { %v384_v11 = vfloor.f32 %v383_v9  ;;  %v476_v12 = vand.u32 4294901760, %v2415_v8  ;;  %p2036_p0 = scmp.lt.s32.totalorder %s1472_s11, %s2034_s23  ;;  %p2037_p2 = scmp.lt.s32.totalorder %s2035_s2, %s2029_s26 }
  0x83   : > { %v994_v41 = vand.u32 4294901760, %v2483_v36  ;;  %p2032_p10 = pneg %p2031_p8 }
  0x84   : > { %v1856_v13 = vtrunc.f32 %v384_v11  ;;  %v477_v18 = vsub.f32 %v2415_v8, %v476_v12  ;;  %p2038_p9 = por %p2037_p2, %p2036_p0 }
  0x85   : > { %v995_v44 = vsub.f32 %v2483_v36, %v994_v41 }
  0x86   : > { %v2422_v16 = vcvt.f32.s32 %v1856_v13  ;;  %v478_v23 = vand.u32 4294901760, %v477_v18  ;;  %p2039_p3 = pnand %p2038_p9, %p2032_p10 }
  0x87   : > { %v996_v47 = vand.u32 4294901760, %v995_v44 }
  0x88   : > { %v2431_v20 = vrot.slane %v2422_v16, %v394_v14  ;;  %v2434_v21 = vrot.slane %v2422_v16, %v912_v15  ;;  %v386_v54 = vmul.u32 32, %v2422_v16 }
  0x8a   : > { %vm397_vm2 = vcmp.eq.s32.totalorder %v2425_v17, %v2431_v20  ;;  %vm396_vm3 = vcmp.eq.s32.totalorder %v2417_v10, %v2431_v20  ;;  %vm914_vm4 = vcmp.eq.s32.totalorder %v2417_v10, %v2434_v21  ;;  %vm915_vm5 = vcmp.eq.s32.totalorder %v2425_v17, %v2434_v21 }
  0x8b   : > { %1773 = vmatpush3.msk.msra.mxu0 %vm397_vm2, %v2165_v24  ;;  %v1701_v25 = vsel %vm396_vm3, 1.0, %v2163_v0  ;;  %v2455_v26 = vsel %vm397_vm2, 1.0, %v2163_v0  ;;  %v1710_v30 = vsel %vm914_vm4, 1.0, %v2163_v0  ;;  %v2477_v33 = vsel %vm915_vm5, 1.0, %v2163_v0 }
  0x8c   : > { %1774 = vmatprep.subr.mxu0 %v2163_v0  ;;  %v521_v27 = vsub.f32 %v1701_v25, %v1701_v25  ;;  %v514_v29 = vsub.f32 %v2455_v26, %v2455_v26  ;;  %1413 = vadd.xlane.f32.xlu1 %v1710_v30  ;;  %v1032_v37 = vsub.f32 %v2477_v33, %v2477_v33  ;;  %v1934_v52 = vpop.eup %1933 }
  0x8d   : > { %1775 = vmatpush3.msk.msra.mxu0 %vm396_vm3, %v2165_v24  ;;  %895 = vadd.xlane.f32.xlu0 %v1701_v25  ;;  %v1039_v40 = vsub.f32 %v1710_v30, %v1710_v30  ;;  %v376_v53 = vadd.f32 1.0, %v1934_v52  ;;  %v387_v55 = vsub.s32 %v2406_v1, %v386_v54 }
  0x8e   : > { %1777 = vmatmul.mubr.f32.vlgmr.msra.gmra.mxu0 %v478_v23  ;;  %v515_v31 = vand.u32 4294901760, %v514_v29  ;;  %1786 = vmatprep.subr.mxu0 %v2163_v0  ;;  %v522_v32 = vand.u32 4294901760, %v521_v27  ;;  %v1033_v42 = vand.u32 4294901760, %v1032_v37 }
  0x8f   : > { %1787 = vmatpush3.msra.mxu0 %v514_v29  ;;  %1790 = vmatprep.mubr.msk.f32.mxu0 %vm2164_vm0, %v2163_v0  ;;  %v1040_v43 = vand.u32 4294901760, %v1039_v40  ;;  %1935 = vrcp.f32 %v376_v53  ;;  %388 = vst [vmem:[%s356_s9] sm:$0x3] %v387_v55 }
  0x90   : > { %v516_v34 = vsub.f32 %v514_v29, %v515_v31  ;;  %v523_v35 = vsub.f32 %v521_v27, %v522_v32  ;;  %1788 = vmatprep.subr.mxu0 %v2163_v0  ;;  %v1034_v45 = vsub.f32 %v1032_v37, %v1033_v42  ;;  %1415 = vadd.xlane.f32.xlu1 %v2477_v33 }
  0x91   : > { %1789 = vmatpush3.msra.mxu0 %v521_v27  ;;  %v1041_v46 = vsub.f32 %v1039_v40, %v1040_v43  ;;  %897 = vadd.xlane.f32.xlu0 %v2455_v26 }
  0x92   : > { %v517_v38 = vand.u32 4294901760, %v516_v34  ;;  %v524_v39 = vand.u32 4294901760, %v523_v35  ;;  %1791 = vmatmul.mubr.f32.vlgmr.msra.gmra.mxu0 %v2415_v8  ;;  %1800 = vmatprep.subr.mxu0 %v2163_v0  ;;  %v1035_v48 = vand.u32 4294901760, %v1034_v45 }
  0x93   : > { %1801 = vmatpush3.msra.mxu0 %v515_v31  ;;  %1804 = vmatprep.mubr.msk.f32.mxu0 %vm2164_vm0, %v2163_v0  ;;  %v1042_v49 = vand.u32 4294901760, %v1041_v46 }
  0x94   : > { %1780 = vmatpush3.msra.mxu1 %v517_v38  ;;  %1802 = vmatprep.subr.mxu0 %v2163_v0 }
  0x95   : > { %1781 = vmatprep.subr.mxu1 %v2163_v0  ;;  %1803 = vmatpush3.msra.mxu0 %v522_v32 }
  0x96   : > { %1782 = vmatpush3.msra.mxu1 %v524_v39  ;;  %1805 = vmatmul.mubr.f32.vlgmr.msra.gmra.mxu0 %v2412_v6 }
  0x97   : > { %1784 = vmatmul.mubr.f32.vlgmr.msra.gmra.mxu1 %v2412_v6  ;;  %1793 = vmatprep.subr.mxu1 %v2163_v0 }
  0x98   : > { %1794 = vmatpush3.msk.msra.mxu1 %vm397_vm2, %v2165_v24  ;;  %1797 = vmatprep.mubr.msk.f32.mxu1 %vm2164_vm0, %v2163_v0 }
  0x99   : > { %1795 = vmatprep.subr.mxu1 %v2163_v0  ;;  %1814 = vmatprep.subr.mxu0 %v2163_v0 }
  0x9a   : > { %1796 = vmatpush3.msk.msra.mxu1 %vm396_vm3, %v2165_v24  ;;  %1815 = vmatpush3.msk.msra.mxu0 %vm915_vm5, %v2165_v24 }
  0x9b   : > { %1798 = vmatmul.mubr.f32.vlgmr.msra.gmra.mxu1 %v476_v12  ;;  %1807 = vmatprep.subr.mxu1 %v2163_v0 }
  0x9c   : > { %1808 = vmatpush3.msk.msra.mxu1 %vm397_vm2, %v2165_v24  ;;  %1811 = vmatprep.mubr.msk.f32.mxu1 %vm2164_vm0, %v2163_v0  ;;  %v1936_v56 = vpop.eup %1935 }
  0x9d   : > { %1809 = vmatprep.subr.mxu1 %v2163_v0  ;;  %1816 = vmatprep.subr.mxu0 %v2163_v0 }
  0x9e   : > { %1810 = vmatpush3.msk.msra.mxu1 %vm396_vm3, %v2165_v24  ;;  %1817 = vmatpush3.msk.msra.mxu0 %vm914_vm4, %v2165_v24 }
  0x9f   : > { %1812 = vmatmul.mubr.f32.vlgmr.msra.gmra.mxu1 %v2412_v6  ;;  %1818 = vmatprep.mubr.msk.f32.mxu0 %vm2164_vm0, %v2163_v0 }
  0xa0   : > { %1821 = vmatprep.subr.mxu1 %v2163_v0  ;;  %1819 = vmatmul.mubr.f32.vlgmr.msra.gmra.mxu0 %v996_v47 }
  0xa1   : > { %1822 = vmatpush3.msra.mxu1 %v1035_v48  ;;  %1828 = vmatprep.subr.mxu0 %v2163_v0 }
  0xa2   : > { %1823 = vmatprep.subr.mxu1 %v2163_v0  ;;  %1829 = vmatpush3.msra.mxu0 %v1032_v37 }
  0xa3   : > { %1824 = vmatpush3.msra.mxu1 %v1042_v49  ;;  %1825 = vmatprep.mubr.msk.f32.mxu1 %vm2164_vm0, %v2163_v0 }
  0xa4   : > { %1830 = vmatprep.subr.mxu0 %v2163_v0  ;;  %1826 = vmatmul.mubr.f32.vlgmr.msra.gmra.mxu1 %v2460_v28 }
  0xa5   : > { %1831 = vmatpush3.msra.mxu0 %v1039_v40  ;;  %1832 = vmatprep.mubr.msk.f32.mxu0 %vm2164_vm0, %v2163_v0 }
  0xa6   : > { %1835 = vmatprep.subr.mxu1 %v2163_v0  ;;  %1833 = vmatmul.mubr.f32.vlgmr.msra.gmra.mxu0 %v2483_v36 }
  0xa7   : > { %1836 = vmatpush3.msk.msra.mxu1 %vm915_vm5, %v2165_v24  ;;  %1842 = vmatprep.subr.mxu0 %v2163_v0 }
  0xa8   : > { %1837 = vmatprep.subr.mxu1 %v2163_v0  ;;  %1843 = vmatpush3.msra.mxu0 %v1033_v42 }
  0xa9   : > { %1838 = vmatpush3.msk.msra.mxu1 %vm914_vm4, %v2165_v24  ;;  %1839 = vmatprep.mubr.msk.f32.mxu1 %vm2164_vm0, %v2163_v0 }
  0xaa   : > { %1844 = vmatprep.subr.mxu0 %v2163_v0  ;;  %1840 = vmatmul.mubr.f32.vlgmr.msra.gmra.mxu1 %v994_v41 }
  0xab   : > { %1845 = vmatpush3.msra.mxu0 %v1040_v43  ;;  %1846 = vmatprep.mubr.msk.f32.mxu0 %vm2164_vm0, %v2163_v0 }
  0xac   : > { %1849 = vmatprep.subr.mxu1 %v2163_v0  ;;  %1847 = vmatmul.mubr.f32.vlgmr.msra.gmra.mxu0 %v2460_v28 }
  0xad   : > { %1850 = vmatpush3.msk.msra.mxu1 %vm915_vm5, %v2165_v24  ;;  %1853 = vmatprep.mubr.msk.f32.mxu1 %vm2164_vm0, %v2163_v0 }
  0xae   : > { %1851 = vmatprep.subr.mxu1 %v2163_v0 }
  0xaf   : > { %1852 = vmatpush3.msk.msra.mxu1 %vm914_vm4, %v2165_v24 }
  0xb0   : > { %1854 = vmatmul.mubr.f32.vlgmr.msra.gmra.mxu1 %v2460_v28 }
  0xb1   : > { %2042 = shalt.err (!%p2039_p3)
}
  0xb2   : > { %s2043_s18 = scalar_lea.hbm %s1469_s21, 32  ;;  %s2047_s10 = scalar_lea.hbm %s2698_s5, 64 }
  0xb3   : > { %p2044_p6 = scmp.ne.s32.totalorder %s1469_s21, %s2043_s18  ;;  %p2048_p5 = scmp.lt.s32.totalorder %s1469_s21, %s2698_s5 }
  0xb4   : > { %p2049_p1 = scmp.lt.s32.totalorder %s2047_s10, %s2043_s18 }
  0xb5   : > { %p2045_p12 = pnand %p2044_p6, %p2727_p11 }
  0xb6   : > { %p2050_p7 = por %p2049_p1, %p2048_p5 }
  0xb7   : > { %p2046_p4 = pneg %p2045_p12 }
  0xb9   : > { %p2051_p13 = pnand %p2050_p7, %p2046_p4 }
  0xbb   : > { %2054 = shalt.err (!%p2051_p13)
}
  0xbc   : > { %1865 = dma.vmem_to_hbm [thread:$0]  (%p2727_p11), %s1472_s11, 32, %s1469_s21, %s2591_s25  }
  0xbd   : > { %s349_s9 = scalar_lea.vmem [#allocation10], %s2383_s20  ;;  %s1456_s26 = scalar_lea.hbm %s2697_s4, %s1725_s12 }
  0xbe   : > { %379 = vst [vmem:[%s349_s9] sm:$0x3] %v1936_v56  ;;  %s1458_s24 = sshll.u32 %s349_s9, 4  ;;  %s1432_s23 = scalar_lea.sflag [#allocation6], %s2380_s8  ;;  %s1459_s24 = int_to_ptr.vmem [resolvable:$true] %s1458_s24 }
  0xbf   : > { %s2055_s2 = scalar_lea.vmem %s1459_s24, 32  ;;  %s2167_s18 = smov [#allocation10]  }
  0xc0   : > { %p2056_p8 = scmp.ne.s32.totalorder %s1459_s24, %s2055_s2  ;;  %s2059_s30 = sshll.u32 %s2167_s18, 4  ;;  %s2060_s30 = int_to_ptr.vmem [resolvable:$false] %s2059_s30 }
  0xc1   : > { %s2061_s19 = scalar_lea.vmem %s2060_s30, 64  ;;  %p2062_p2 = scmp.lt.s32.totalorder %s1459_s24, %s2060_s30 }
  0xc2   : > { %p2057_p10 = pnand %p2056_p8, %p2727_p11  ;;  %p2063_p9 = scmp.lt.s32.totalorder %s2061_s19, %s2055_s2 }
  0xc4   : > { %p2058_p0 = pneg %p2057_p10  ;;  %p2064_p3 = por %p2063_p9, %p2062_p2 }
  0xc6   : > { %p2065_p6 = pnand %p2064_p3, %p2058_p0 }
  0xc8   : > { %2068 = shalt.err (!%p2065_p6)
}
  0xc9   : > { %s2069_s20 = scalar_lea.hbm %s1456_s26, 32  ;;  %s2073_s21 = scalar_lea.hbm %s2697_s4, 64 }
  0xca   : > { %p2070_p12 = scmp.ne.s32.totalorder %s1456_s26, %s2069_s20  ;;  %p2074_p1 = scmp.lt.s32.totalorder %s1456_s26, %s2697_s4 }
  0xcb   : > { %p2075_p7 = scmp.lt.s32.totalorder %s2073_s21, %s2069_s20 }
  0xcc   : > { %p2071_p4 = pnand %p2070_p12, %p2727_p11 }
  0xcd   : > { %p2076_p13 = por %p2075_p7, %p2074_p1 }
  0xce   : > { %p2072_p5 = pneg %p2071_p4 }
  0xd0   : > { %p2077_p8 = pnand %p2076_p13, %p2072_p5 }
  0xd2   : > { %2080 = shalt.err (!%p2077_p8)
}
  0xd3   : > { %1864 = dma.vmem_to_hbm [thread:$0]  (%p2727_p11), %s1459_s24, 32, %s1456_s26, %s1432_s23   ;;  %v2168_v59 = vmov 0   ;;  %vm1429_vm10 = vcmask 0   ;;  %vm888_vm11 = vcmask 1040384   ;;  %vm890_vm12 = vcmask 1041408  }
  0xd4   : > { %p369_p10 = scmp.lt.s32.totalorder %s2236_s0, 1  ;;  %s2631_s26 = sshll.u32 %s2236_s0, 2  ;;  %vm892_vm13 = vcmask 1042432  }
  0xd5   : > { %s868_s24 = sadd.s32 1, %s2631_s26  ;;  %s867_s23 = sld [smem:[#allocation3 + %s2631_s26]] }
  0xd6   : > { %s370_s13 = scalar_select %p369_p10, %s2236_s0, 1 }
  0xd7   : > { %s869_s2 = sld [smem:[#allocation3 + %s868_s24]]  ;;  %s1733_s18 = sadd.s32 2, %s2631_s26 }
  0xd8   : > { %s371_s16 = scalar_lea.vmem %s2700_s7, %s370_s13  ;;  %s1388_s30 = sadd.s32 1, %s1733_s18 }
  0xd9   : > { %s1387_s19 = sld [smem:[#allocation3 + %s1733_s18]]  ;;  %s363_s20 = scalar_lea.vmem [#allocation13], %s1696_s29 }
  0xda   : > { %s1389_s12 = sld [smem:[#allocation3 + %s1388_s30]]  ;;  %s1484_s11 = sshll.u32 %s363_s20, 4  ;;  %s2643_s11 = int_to_ptr.vmem [resolvable:$true] %s1484_s11 }
  0xdb   : > { %v875_v39 = vstv %s867_s23  ;;  %s1734_s8 = sshll.u32 %s2236_s0, 7  ;;  %s2081_s0 = scalar_lea.vmem %s2643_s11, 128 }
  0xdc   : > { %s2648_s10 = scalar_lea.hbm %s2699_s6, %s1734_s8  ;;  %p2082_p0 = scmp.ne.s32.totalorder %s2643_s11, %s2081_s0 }
  0xdd   : > { %v877_v40 = vstv %s869_s2  ;;  %s2169_s17 = smov [#allocation13]  }
  0xde   : > { %p2083_p2 = pnand %p2082_p0, %p2727_p11  ;;  %s2085_s13 = sshll.u32 %s2169_s17, 4  ;;  %s2086_s13 = int_to_ptr.vmem [resolvable:$false] %s2085_s13 }
  0xdf   : > { %s2087_s9 = scalar_lea.vmem %s2086_s13, 256  ;;  %p2088_p3 = scmp.lt.s32.totalorder %s2643_s11, %s2086_s13 }
  0xe0   : > { %p2084_p9 = pneg %p2083_p2  ;;  %p2089_p6 = scmp.lt.s32.totalorder %s2087_s9, %s2081_s0 }
  0xe2   : > { %p2090_p12 = por %p2089_p6, %p2088_p3 }
  0xe4   : > { %p2091_p4 = pnand %p2090_p12, %p2084_p9 }
 0x115   : > { %v1414_v57 = vpop.xlane.xlu1 %1413 }
 0x116   : > { %v896_v58 = vpop.xlane.xlu0 %895  ;;  %vm1417_vm6 = vcmp.gt.f32.partialorder %v1414_v57, 1.0 }
 0x117   : > { %vm899_vm7 = vcmp.gt.f32.partialorder %v896_v58, 1.0  ;;  %v1419_v60 = vsel %vm1417_vm6, 1, %v2168_v59 }
 0x118   : > { %v901_v62 = vsel %vm899_vm7, 1, %v2168_v59 }
 0x119   : > { %v1416_v61 = vpop.xlane.xlu1 %1415 }
 0x11a   : > { %vm1418_vm8 = vcmp.gt.f32.partialorder %v1416_v61, 1.0  ;;  %v898_v63 = vpop.xlane.xlu0 %897 }
 0x11b   : > { %v1420_v0 = vsel %vm1418_vm8, 1, %v2168_v59  ;;  %vm900_vm9 = vcmp.gt.f32.partialorder %v898_v63, 1.0 }
 0x11c   : > { %v1421_v1 = vadd.s32 %v1420_v0, %v1419_v60  ;;  %v902_v2 = vsel %vm900_vm9, 1, %v2168_v59 }
 0x11d   : > { %v903_v3 = vadd.s32 %v902_v2, %v901_v62 }
 0x11e   : > { %v1422_v4 = vrot.slane %v1421_v1, 4 }
 0x11f   : > { %v904_v5 = vrot.slane %v903_v3, 4 }
 0x120   : > { %v1423_v6 = vadd.s32 %v1422_v4, %v1421_v1  ;;  %v1395_v4 = vstv %s1387_s19 }
 0x121   : > { %v905_v7 = vadd.s32 %v904_v5, %v903_v3  ;;  %v1397_v5 = vstv %s1389_s12 }
 0x122   : > { %v1424_v8 = vrot.slane %v1423_v6, 2 }
 0x123   : > { %v906_v9 = vrot.slane %v905_v7, 2 }
 0x124   : > { %v1425_v10 = vadd.s32 %v1424_v8, %v1423_v6 }
 0x125   : > { %v907_v11 = vadd.s32 %v906_v9, %v905_v7 }
 0x126   : > { %v1426_v12 = vrot.slane %v1425_v10, 1 }
 0x127   : > { %v908_v13 = vrot.slane %v907_v11, 1 }
 0x128   : > { %v1427_v14 = vadd.s32 %v1426_v12, %v1425_v10 }
 0x129   : > { %v909_v15 = vadd.s32 %v908_v13, %v907_v11 }
 0x12b   : > { %v1428_v16 = vadd.s32 %v1427_v14, %v909_v15 }
 0x12d   : > { %1430 = vst.msk [vmem:[%s371_s16] sm:$0x1] %vm1429_vm10, %v1428_v16 }
 0x14e   : > { %v480_v17 = vpop.f32.mrf.mxu0 }
 0x150   : > { %v1778_v18 = vpop.f32.mrf.mxu0 }
 0x152   : > { %v637_v19 = vpop.f32.mrf.mxu0 }
 0x154   : > { %v1792_v20 = vpop.f32.mrf.mxu0 }
 0x156   : > { %v789_v21 = vpop.f32.mrf.mxu0 }
 0x157   : > { %v561_v22 = vpop.f32.mrf.mxu1 }
 0x158   : > { %v562_v23 = vadd.f32 %v561_v22, %v480_v17  ;;  %v1806_v24 = vpop.f32.mrf.mxu0 }
 0x159   : > { %v1785_v25 = vpop.f32.mrf.mxu1 }
 0x15a   : > { %v638_v26 = vadd.f32 %v637_v19, %v562_v23 }
 0x15b   : > { %v712_v27 = vpop.f32.mrf.mxu1 }
 0x15c   : > { %v713_v28 = vadd.f32 %v712_v27, %v638_v26 }
 0x15d   : > { %v1799_v29 = vpop.f32.mrf.mxu1 }
 0x15e   : > { %v790_v30 = vadd.f32 %v789_v21, %v713_v28 }
 0x15f   : > { %v862_v31 = vpop.f32.mrf.mxu1 }
 0x160   : > { %v863_v32 = vadd.f32 %v862_v31, %v790_v30  ;;  %v998_v33 = vpop.f32.mrf.mxu0 }
 0x161   : > { %v1813_v34 = vpop.f32.mrf.mxu1 }
 0x162   : > { %v870_v35 = vmul.f32 0.5, %v863_v32  ;;  %v1820_v36 = vpop.f32.mrf.mxu0 }
 0x164   : > { %v872_v37 = vrot.slane %v870_v35, 2  ;;  %v1079_v38 = vpop.f32.mrf.mxu1 }
 0x165   : > { %v1080_v41 = vadd.f32 %v1079_v38, %v998_v33 }
 0x166   : > { %v874_v42 = vsub.f32 %v863_v32, %v872_v37  ;;  %v879_v43 = vadd.f32 %v872_v37, %v863_v32  ;;  %v1155_v44 = vpop.f32.mrf.mxu0  ;;  %v1827_v45 = vpop.f32.mrf.mxu1 }
 0x167   : > { %v1156_v46 = vadd.f32 %v1155_v44, %v1080_v41 }
 0x168   : > { %v876_v47 = vmul.f32 %v875_v39, %v874_v42  ;;  %v878_v48 = vmul.f32 %v877_v40, %v874_v42  ;;  %v880_v49 = vmul.f32 %v879_v43, %v875_v39  ;;  %v881_v50 = vmul.f32 %v879_v43, %v877_v40  ;;  %v1834_v51 = vpop.f32.mrf.mxu0 }
 0x16a   : > { %v883_v52 = vrot.slane %v880_v49, 6  ;;  %v886_v53 = vrot.slane %v881_v50, 6  ;;  %v889_v54 = vsel %vm888_vm11, %v876_v47, %v878_v48  ;;  %v1230_v55 = vpop.f32.mrf.mxu1 }
 0x16b   : > { %v1231_v56 = vadd.f32 %v1230_v55, %v1156_v46 }
 0x16c   : > { %v891_v57 = vsel %vm890_vm12, %v889_v54, %v883_v52  ;;  %v1307_v58 = vpop.f32.mrf.mxu0  ;;  %v1841_v59 = vpop.f32.mrf.mxu1 }
 0x16d   : > { %v893_v60 = vsel %vm892_vm13, %v891_v57, %v886_v53  ;;  %v1308_v61 = vadd.f32 %v1307_v58, %v1231_v56 }
 0x16e   : > { %894 = vst [vmem:[%s363_s20] sm:$0xf] %v893_v60  ;;  %v1848_v62 = vpop.f32.mrf.mxu0 }
 0x170   : > { %v1380_v63 = vpop.f32.mrf.mxu1 }
 0x171   : > { %v1381_v0 = vadd.f32 %v1380_v63, %v1308_v61 }
 0x172   : > { %v1855_v1 = vpop.f32.mrf.mxu1 }
 0x173   : > { %v1390_v2 = vmul.f32 0.5, %v1381_v0 }
 0x175   : > { %v1392_v3 = vrot.slane %v1390_v2, 2 }
 0x177   : > { %v1394_v6 = vsub.f32 %v1381_v0, %v1392_v3  ;;  %v1399_v7 = vadd.f32 %v1392_v3, %v1381_v0 }
 0x179   : > { %v1396_v8 = vmul.f32 %v1395_v4, %v1394_v6  ;;  %v1398_v9 = vmul.f32 %v1397_v5, %v1394_v6  ;;  %v1400_v10 = vmul.f32 %v1399_v7, %v1395_v4  ;;  %v1401_v11 = vmul.f32 %v1399_v7, %v1397_v5 }
 0x17b   : > { %v1403_v12 = vrot.slane %v1400_v10, 6  ;;  %v1406_v13 = vrot.slane %v1401_v11, 6  ;;  %v1408_v14 = vsel %vm888_vm11, %v1396_v8, %v1398_v9 }
 0x17d   : > { %v1409_v15 = vsel %vm890_vm12, %v1408_v14, %v1403_v12 }
 0x17e   : > { %v1410_v16 = vsel %vm892_vm13, %v1409_v15, %v1406_v13 }
 0x17f   : > { %1721 = vst [vmem:[%s363_s20 + $0x4] sm:$0xf] %v1410_v16 }
 0x180   : > { %2094 = shalt.err (!%p2091_p4)
}
 0x181   : > { %s2095_s22 = scalar_lea.hbm %s2648_s10, 128  ;;  %s2099_s24 = scalar_lea.hbm %s2699_s6, 256 }
 0x182   : > { %p2096_p5 = scmp.ne.s32.totalorder %s2648_s10, %s2095_s22  ;;  %p2100_p13 = scmp.lt.s32.totalorder %s2648_s10, %s2699_s6 }
 0x183   : > { %p2101_p8 = scmp.lt.s32.totalorder %s2099_s24, %s2095_s22 }
 0x184   : > { %p2097_p1 = pnand %p2096_p5, %p2727_p11 }
 0x185   : > { %p2102_p10 = por %p2101_p8, %p2100_p13 }
 0x186   : > { %p2098_p7 = pneg %p2097_p1 }
 0x188   : > { %p2103_p0 = pnand %p2102_p10, %p2098_p7 }
 0x18a   : > { %2106 = shalt.err (!%p2103_p0)
}
 0x18b   : > { %s2170_s18 = smov 64   ;;  %s2171_s30 = smov 4  }
 0x18c   : > { %1866 = dma.vmem_to_hbm [thread:$0]  (%p2727_p11), %s2643_s11, 128, %s2648_s10, %s2591_s25, %s2170_s18, %s2170_s18, %s2171_s30  }
 0x18d PF: > { %s2728_s19 = sld [smem:[#allocation20_spill]]  ;;  %s1502_s20 = sand.u32 1, %s2143_s27  }
 0x18e   : > { %p2729_p2 = scmp.ne.s32.totalorder %s2718_s15, 0  ;;  %s1503_s12 = scalar_lea.sflag [#allocation6], %s1502_s20 }
 0x193   : > { %p2730_p9 = scmp.ge.s32.totalorder %s2728_s19, 2 }
 0x195   : > { %p1881_p3 = pnand %p2730_p9, %p2729_p2 }
 0x197   : > { %p1882_p6 = pneg %p1881_p3 }
 0x199   : > { %2134 = dma.done.wait (%p1882_p6), %s1503_s12, 32  }
 0x19a   : > { %2136 = vsyncadd (%p1882_p6), %s1503_s12, 4294967264  ;;  %s2731_s8 = sadd.s32 4294967294, %s2728_s19  }
 0x19b   : > { %s1511_s29 = sand.u32 1, %s2731_s8  }
 0x19c   : > { %s1512_s21 = scalar_lea.sflag [#allocation12], %s1511_s29 }
 0x19d   : > { %2138 = dma.done.wait (%p1882_p6), %s1512_s21, 160  }
 0x19e   : > { %2140 = vsyncadd (%p1882_p6), %s1512_s21, 4294967136  ;;  %s2732_s30 = sld [smem:[#allocation21_spill]]  ;;  %s2735_s27 = smov %s2147_s28 }
 0x19f   : > { %s2733_s14 = sld [smem:[#allocation19_spill]] }
 0x1a0   : > { %s2734_s29 = sld [smem:[#allocation22_spill]] }
 0x1a4   : > { %p31_p11 = scmp.ge.s32.totalorder %s2732_s30, 4  }
 0x1a5   : > { %s2736_s28 = smov %s2733_s14 }
 0x1a6   :  { %33 = sbr.rel (!%p31_p11) target bundleno = 15 (0xf), region = 147 }
 0x1ab   :  { %1532 = vsyncpa [#allocation5], 1 }
 0x1ac   :  { %1534 = vsyncpa [#allocation5 + $0x1], 1 }
 0x1ad   :  { %1535 = vsyncpa [#allocation8], 1 }
 0x1ae   :  { %1537 = vsyncpa [#allocation8 + $0x1], 1 }
 0x1af   :  { %1538 = vsyncpa [#allocation6], 1 }
 0x1b0   :  { %1540 = vsyncpa [#allocation6 + $0x1], 1 }
 0x1b1   :  { %1541 = vsyncpa [#allocation12], 1 }
 0x1b2   :  { %1543 = vsyncpa [#allocation12 + $0x1], 1 }

</bundles_post_ra>
